<compile_context>
chip_gen: v6e
topology: v6e:2x2x1
jax: 0.10.0
libtpu: 0.0.40
codegen_flags: <defaults>
</compile_context>

<pallas_src>
import functools

import jax
import jax.numpy as jnp
from jax.experimental import pallas as pl
from jax.experimental.pallas import tpu as pltpu

LANE = 128        # pad feature dims to this (use 256 on v7x)
SUBLANE = 8       # f32 sublane granularity
NEG_INF = -1e30   # sentinel bias for padded action lanes (exp -> 0)


def _round_up(x, m):
    return (x + m - 1) // m * m


def _policy_kernel(x_ref, w1_ref, w2_ref, w3_ref, b_ref, out_ref, *, dh, dout):
    # x tile: (TB, d_in) f32; weights bf16 (padded); merged bias f32 (8, d_max).
    x = x_ref[...].astype(jnp.bfloat16)

    b1 = b_ref[0:1, :dh]     # fc1 bias
    b2 = b_ref[1:2, :dh]     # fc2 bias
    b3 = b_ref[2:3, :dout]   # fc3 bias (padded lanes = NEG_INF)

    # fc1 + ReLU  (bf16 MXU inputs, f32 accumulate / elementwise)
    h = jnp.dot(x, w1_ref[...], preferred_element_type=jnp.float32) + b1
    h = jnp.maximum(h, 0.0).astype(jnp.bfloat16)

    # fc2 + ReLU
    h = jnp.dot(h, w2_ref[...], preferred_element_type=jnp.float32) + b2
    h = jnp.maximum(h, 0.0).astype(jnp.bfloat16)

    # fc3 (logits)
    logits = jnp.dot(h, w3_ref[...], preferred_element_type=jnp.float32) + b3

    # Numerically stable softmax over the (lane-dense, padded) action axis.
    # Padded lanes carry a -1e30 bias, so exp underflows to exactly 0 and they
    # drop out of the denominator.
    m = jnp.max(logits, axis=-1, keepdims=True)
    e = jnp.exp(logits - m)
    denom = jnp.sum(e, axis=-1, keepdims=True)
    out_ref[...] = e * pl.reciprocal(denom, approx=True)


def init_raw_params(key, state_dim, action_dim, hidden_dim):
    """f32 params, nn.Linear-style init; W stored [in, out] (== torch W.T)."""
    ks = jax.random.split(key, 6)

    def linear(kw, kb, fan_in, fan_out):
        bound = 1.0 / float(fan_in) ** 0.5
        w = jax.random.uniform(kw, (fan_in, fan_out), jnp.float32, -bound, bound)
        b = jax.random.uniform(kb, (fan_out,), jnp.float32, -bound, bound)
        return w, b

    w1, b1 = linear(ks[0], ks[1], state_dim, hidden_dim)
    w2, b2 = linear(ks[2], ks[3], hidden_dim, hidden_dim)
    w3, b3 = linear(ks[4], ks[5], hidden_dim, action_dim)
    return dict(w1=w1, b1=b1, w2=w2, b2=b2, w3=w3, b3=b3)


def pack_params(raw, state_dim, action_dim, hidden_dim, lane=LANE):
    """Pad feature dims to the lane width, cast weights to bf16, merge biases."""
    d_in = _round_up(state_dim, lane)
    d_h = _round_up(hidden_dim, lane)
    d_out = _round_up(action_dim, lane)
    d_max = max(d_h, d_out)

    def pad2(w, rows, cols):
        return jnp.pad(w, ((0, rows - w.shape[0]), (0, cols - w.shape[1])))

    w1 = pad2(raw["w1"], d_in, d_h).astype(jnp.bfloat16)
    w2 = pad2(raw["w2"], d_h, d_h).astype(jnp.bfloat16)
    w3 = pad2(raw["w3"], d_h, d_out).astype(jnp.bfloat16)

    # Single merged bias tile (one DMA, one padded VMEM tile):
    #   row 0: fc1 bias, row 1: fc2 bias, row 2: fc3 bias (pad lanes = NEG_INF).
    bias = jnp.zeros((SUBLANE, d_max), jnp.float32)
    bias = bias.at[0, :hidden_dim].set(raw["b1"])
    bias = bias.at[1, :hidden_dim].set(raw["b2"])
    bias = bias.at[2, :d_out].set(
        jnp.pad(raw["b3"], (0, d_out - action_dim), constant_values=NEG_INF))

    dims = dict(state_dim=state_dim, action_dim=action_dim,
                hidden_dim=hidden_dim, d_in=d_in, d_h=d_h, d_out=d_out)
    return dict(w1=w1, w2=w2, w3=w3, bias=bias, dims=dims)


@functools.partial(jax.jit, static_argnums=(5, 6, 7, 8, 9))
def _forward_impl(state, w1, w2, w3, bias, d_in, d_h, d_out, action_dim, tb):
    """Jitted: pad batch/features -> fused Pallas MLP+softmax -> un-pad slice."""
    B, s_dim = state.shape
    bp = _round_up(B, tb)
    nb = bp // tb

    x = jnp.pad(state.astype(jnp.float32),
                ((0, bp - B), (0, d_in - s_dim)))

    kernel = functools.partial(_policy_kernel, dh=d_h, dout=d_out)

    probs_padded = pl.pallas_call(
        kernel,
        out_shape=jax.ShapeDtypeStruct((bp, d_out), jnp.float32),
        grid=(nb,),
        in_specs=[
            pl.BlockSpec((tb, d_in), lambda i: (i, 0)),       # state tile
            pl.BlockSpec((d_in, d_h), lambda i: (0, 0)),      # w1 (resident)
            pl.BlockSpec((d_h, d_h), lambda i: (0, 0)),       # w2 (resident)
            pl.BlockSpec((d_h, d_out), lambda i: (0, 0)),     # w3 (resident)
            pl.BlockSpec(bias.shape, lambda i: (0, 0)),       # merged bias
        ],
        out_specs=pl.BlockSpec((tb, d_out), lambda i: (i, 0)),
        compiler_params=pltpu.CompilerParams(
            # Independent batch tiles -> shard across TensorCores on v7x.
            dimension_semantics=("parallel",),
        ),
    )(x, w1, w2, w3, bias)

    return probs_padded[:B, :action_dim]


def policy_network_forward(state, params, batch_tile=256):
    """state: [B, state_dim] f32 -> [B, action_dim] f32 action probabilities."""
    dims = params["dims"]
    B = state.shape[0]
    # Batch tile: multiple of 8 sublanes, capped at 256 rows for throughput.
    tb = min(batch_tile, _round_up(max(B, 1), SUBLANE))
    return _forward_impl(state, params["w1"], params["w2"], params["w3"],
                         params["bias"], dims["d_in"], dims["d_h"],
                         dims["d_out"], dims["action_dim"], tb)


if __name__ == "__main__":
    B, state_dim, action_dim, hidden_dim = 2, 16, 8, 32

    key = jax.random.PRNGKey(0)
    k_params, k_state = jax.random.split(key)
    raw = init_raw_params(k_params, state_dim, action_dim, hidden_dim)
    params = pack_params(raw, state_dim, action_dim, hidden_dim)
    state = jax.random.normal(k_state, (B, state_dim), jnp.float32)

    probs = policy_network_forward(state, params)
    probs = jax.block_until_ready(probs)

    # Reference 1: mimics the kernel's numerics (bf16 MXU inputs, f32 accum).
    def ref_bf16(x, p):
        c = lambda a: a.astype(jnp.bfloat16)
        h = jnp.maximum(
            jnp.dot(c(x), c(p["w1"]), preferred_element_type=jnp.float32) + p["b1"], 0.0)
        h = jnp.maximum(
            jnp.dot(c(h), c(p["w2"]), preferred_element_type=jnp.float32) + p["b2"], 0.0)
        logits = jnp.dot(c(h), c(p["w3"]), preferred_element_type=jnp.float32) + p["b3"]
        return jax.nn.softmax(logits, axis=-1)

    # Reference 2: pure f32 PyTorch semantics (looser tol: bf16 weights + vrcp).
    def ref_f32(x, p):
        h = jnp.maximum(x @ p["w1"] + p["b1"], 0.0)
        h = jnp.maximum(h @ p["w2"] + p["b2"], 0.0)
        return jax.nn.softmax(h @ p["w3"] + p["b3"], axis=-1)

    assert probs.shape == (B, action_dim)
    assert bool(jnp.all(jnp.isfinite(probs)))
    assert jnp.allclose(probs, ref_bf16(state, raw), atol=5e-3, rtol=5e-3)
    assert jnp.allclose(probs, ref_f32(state, raw), atol=3e-2, rtol=3e-2)
    assert jnp.allclose(jnp.sum(probs, axis=-1), 1.0, atol=5e-3)

    print("KERNEL_OK")
</pallas_src>

<mosaic_0001>
module attributes {stable_mosaic.version = 11 : i64} {
  func.func @_policy_kernel(%arg0: i32, %arg1: memref<8x128xf32, #tpu.memory_space<vmem>>, %arg2: memref<128x128xbf16, #tpu.memory_space<vmem>>, %arg3: memref<128x128xbf16, #tpu.memory_space<vmem>>, %arg4: memref<128x128xbf16, #tpu.memory_space<vmem>>, %arg5: memref<8x128xf32, #tpu.memory_space<vmem>>, %arg6: memref<8x128xf32, #tpu.memory_space<vmem>>) attributes {dimension_semantics = [#tpu.dimension_semantics<parallel>], iteration_bounds = array<i64: 1>, scalar_prefetch = 0 : i64, scratch_operands = 0 : i64, tpu.core_type = #tpu.core_type<tc>, window_params = [{transform_indices = @transform_0, window_bounds = array<i64: 8, 128>}, {pipeline_mode = #tpu.pipeline_mode<synchronous>, transform_indices = @transform_1, window_bounds = array<i64: 128, 128>}, {pipeline_mode = #tpu.pipeline_mode<synchronous>, transform_indices = @transform_2, window_bounds = array<i64: 128, 128>}, {pipeline_mode = #tpu.pipeline_mode<synchronous>, transform_indices = @transform_3, window_bounds = array<i64: 128, 128>}, {pipeline_mode = #tpu.pipeline_mode<synchronous>, transform_indices = @transform_4, window_bounds = array<i64: 8, 128>}, {transform_indices = @transform_5, window_bounds = array<i64: 8, 128>}]} {
    %c0 = arith.constant 0 : index
    %c0_0 = arith.constant 0 : index
    %0 = vector.load %arg1[%c0, %c0_0] : memref<8x128xf32, #tpu.memory_space<vmem>>, vector<8x128xf32>
    %1 = arith.truncf %0 : vector<8x128xf32> to vector<8x128xbf16>
    %c0_1 = arith.constant 0 : index
    %c0_2 = arith.constant 0 : index
    %2 = vector.load %arg5[%c0_1, %c0_2] : memref<8x128xf32, #tpu.memory_space<vmem>>, vector<1x128xf32>
    %c1 = arith.constant 1 : index
    %c0_3 = arith.constant 0 : index
    %3 = vector.load %arg5[%c1, %c0_3] : memref<8x128xf32, #tpu.memory_space<vmem>>, vector<1x128xf32>
    %c2 = arith.constant 2 : index
    %c0_4 = arith.constant 0 : index
    %4 = vector.load %arg5[%c2, %c0_4] : memref<8x128xf32, #tpu.memory_space<vmem>>, vector<1x128xf32>
    %c0_5 = arith.constant 0 : index
    %c0_6 = arith.constant 0 : index
    %5 = vector.load %arg2[%c0_5, %c0_6] : memref<128x128xbf16, #tpu.memory_space<vmem>>, vector<128x128xbf16>
    %cst = arith.constant dense<0.000000e+00> : vector<8x128xf32>
    %6 = tpu.matmul %1, %5, %cst {dimension_numbers = #tpu.dot_dimension_numbers<[1], [0], [0], [1], [0, 0, 1, 1], [], []>} : vector<8x128xbf16>, vector<128x128xbf16>, vector<8x128xf32> -> vector<8x128xf32>
    %7 = vector.broadcast %2 : vector<1x128xf32> to vector<8x128xf32>
    %8 = arith.addf %6, %7 : vector<8x128xf32>
    %cst_7 = arith.constant 0.000000e+00 : f32
    %9 = vector.broadcast %cst_7 : f32 to vector<8x128xf32>
    %10 = arith.maximumf %8, %9 : vector<8x128xf32>
    %11 = arith.truncf %10 : vector<8x128xf32> to vector<8x128xbf16>
    %c0_8 = arith.constant 0 : index
    %c0_9 = arith.constant 0 : index
    %12 = vector.load %arg3[%c0_8, %c0_9] : memref<128x128xbf16, #tpu.memory_space<vmem>>, vector<128x128xbf16>
    %cst_10 = arith.constant dense<0.000000e+00> : vector<8x128xf32>
    %13 = tpu.matmul %11, %12, %cst_10 {dimension_numbers = #tpu.dot_dimension_numbers<[1], [0], [0], [1], [0, 0, 1, 1], [], []>} : vector<8x128xbf16>, vector<128x128xbf16>, vector<8x128xf32> -> vector<8x128xf32>
    %14 = vector.broadcast %3 : vector<1x128xf32> to vector<8x128xf32>
    %15 = arith.addf %13, %14 : vector<8x128xf32>
    %cst_11 = arith.constant 0.000000e+00 : f32
    %16 = vector.broadcast %cst_11 : f32 to vector<8x128xf32>
    %17 = arith.maximumf %15, %16 : vector<8x128xf32>
    %18 = arith.truncf %17 : vector<8x128xf32> to vector<8x128xbf16>
    %c0_12 = arith.constant 0 : index
    %c0_13 = arith.constant 0 : index
    %19 = vector.load %arg4[%c0_12, %c0_13] : memref<128x128xbf16, #tpu.memory_space<vmem>>, vector<128x128xbf16>
    %cst_14 = arith.constant dense<0.000000e+00> : vector<8x128xf32>
    %20 = tpu.matmul %18, %19, %cst_14 {dimension_numbers = #tpu.dot_dimension_numbers<[1], [0], [0], [1], [0, 0, 1, 1], [], []>} : vector<8x128xbf16>, vector<128x128xbf16>, vector<8x128xf32> -> vector<8x128xf32>
    %21 = vector.broadcast %4 : vector<1x128xf32> to vector<8x128xf32>
    %22 = arith.addf %20, %21 : vector<8x128xf32>
    %cst_15 = arith.constant dense<0xFF800000> : vector<8xf32>
    %23 = vector.multi_reduction <maximumf>, %22, %cst_15 [1] : vector<8x128xf32> to vector<8xf32>
    %24 = vector.shape_cast %23 : vector<8xf32> to vector<8x1xf32>
    %25 = vector.broadcast %24 : vector<8x1xf32> to vector<8x128xf32>
    %26 = arith.subf %22, %25 : vector<8x128xf32>
    %27 = math.exp %26 : vector<8x128xf32>
    %cst_16 = arith.constant dense<0.000000e+00> : vector<8xf32>
    %28 = vector.multi_reduction <add>, %27, %cst_16 [1] : vector<8x128xf32> to vector<8xf32>
    %29 = vector.shape_cast %28 : vector<8xf32> to vector<8x1xf32>
    %30 = tpu.reciprocal %29 {approx = true} : vector<8x1xf32> -> vector<8x1xf32>
    %31 = vector.broadcast %30 : vector<8x1xf32> to vector<8x128xf32>
    %32 = arith.mulf %27, %31 : vector<8x128xf32>
    %c0_17 = arith.constant 0 : index
    %c0_18 = arith.constant 0 : index
    %33 = vector.load %arg6[%c0_17, %c0_18] : memref<8x128xf32, #tpu.memory_space<vmem>>, vector<8x128xf32>
    tpu.vector_store %arg6[%c0_17, %c0_18], %32 {strides = array<i32>} : memref<8x128xf32, #tpu.memory_space<vmem>>, vector<8x128xf32>,
    return
  }
  func.func @transform_0(%arg0: i32) -> (i32, i32) {
    %c0_i32 = arith.constant 0 : i32
    %c0_i32_0 = arith.constant 0 : i32
    return %arg0, %c0_i32 : i32, i32
  }
  func.func @transform_1(%arg0: i32) -> (i32, i32) {
    %c0_i32 = arith.constant 0 : i32
    %c0_i32_0 = arith.constant 0 : i32
    %c0_i32_1 = arith.constant 0 : i32
    return %c0_i32, %c0_i32_0 : i32, i32
  }
  func.func @transform_2(%arg0: i32) -> (i32, i32) {
    %c0_i32 = arith.constant 0 : i32
    %c0_i32_0 = arith.constant 0 : i32
    %c0_i32_1 = arith.constant 0 : i32
    return %c0_i32, %c0_i32_0 : i32, i32
  }
  func.func @transform_3(%arg0: i32) -> (i32, i32) {
    %c0_i32 = arith.constant 0 : i32
    %c0_i32_0 = arith.constant 0 : i32
    %c0_i32_1 = arith.constant 0 : i32
    return %c0_i32, %c0_i32_0 : i32, i32
  }
  func.func @transform_4(%arg0: i32) -> (i32, i32) {
    %c0_i32 = arith.constant 0 : i32
    %c0_i32_0 = arith.constant 0 : i32
    %c0_i32_1 = arith.constant 0 : i32
    return %c0_i32, %c0_i32_0 : i32, i32
  }
  func.func @transform_5(%arg0: i32) -> (i32, i32) {
    %c0_i32 = arith.constant 0 : i32
    %c0_i32_0 = arith.constant 0 : i32
    return %arg0, %c0_i32 : i32, i32
  }
}

</mosaic_0001>

<bundles_post_ra>
// kernel: _forward_impl.1
= control target key start
LH: loop header
LB: loop body
LE: loop exit
PB: predicated region body
PF: predicated region fallthrough
CT: control target
= control target key end

     0   :  { %10 = vsyncpa [#allocation3], 0  ;;  %s715_s0 = inlined_call_operand.vmem [shape: f32[8,128], index: 0, kind: input, shape index: {}]   ;;  %s716_s1 = inlined_call_operand.hbm [shape: bf16[128,128], index: 1, kind: input, shape index: {}]   ;;  %s717_s2 = inlined_call_operand.hbm [shape: bf16[128,128], index: 2, kind: input, shape index: {}]   ;;  %s718_s3 = inlined_call_operand.hbm [shape: bf16[128,128], index: 3, kind: input, shape index: {}]   ;;  %s719_s4 = inlined_call_operand.vmem [shape: f32[8,128], index: 4, kind: input, shape index: {}]   ;;  %s720_s5 = inlined_call_operand.vmem [shape: f32[8,128], index: 5, kind: output, shape index: {}]  }
   0x1   :  { %11 = vsyncpa [#allocation5], 0  ;;  %s624_s18 = smov [#allocation4]   ;;  %s625_s20 = smov [#allocation2]  }
   0x2   :  { %s31_s19 = sshll.u32 %s624_s18, 4  ;;  %s19_s21 = sshll.u32 %s625_s20, 4  ;;  %s32_s19 = int_to_ptr.vmem [resolvable:$true] %s31_s19  ;;  %s20_s21 = int_to_ptr.vmem [resolvable:$true] %s19_s21 }
   0x3   :  { %s568_s22 = scalar_lea.vmem %s32_s19, 1024  ;;  %p573_p1 = scmp.lt.s32.totalorder %s32_s19, %s32_s19 }
   0x4   :  { %p569_p0 = scmp.ne.s32.totalorder %s32_s19, %s568_s22  ;;  %p574_p2 = scmp.lt.s32.totalorder %s568_s22, %s568_s22 }
   0x6   :  { %p575_p3 = por %p574_p2, %p573_p1 }
   0x8   :  { %p576_p4 = pnand %p575_p3, %p569_p0 }
   0xa   :  { %579 = shalt.err (!%p576_p4)
}
   0xb   :  { %s626_s23 = smov 64   ;;  %s627_s24 = smov 4  }
   0xc   :  { %37 = dma.hbm_to_vmem [thread:$0]  %s717_s2, 1024, %s32_s19, [#allocation5], %s626_s23, %s626_s23, %s627_s24  }
   0xd   :  { %s588_s27 = scalar_lea.vmem %s20_s21, 1024  ;;  %p593_p6 = scmp.lt.s32.totalorder %s20_s21, %s20_s21 }
   0xe   :  { %p589_p5 = scmp.ne.s32.totalorder %s20_s21, %s588_s27  ;;  %p594_p7 = scmp.lt.s32.totalorder %s588_s27, %s588_s27 }
  0x10   :  { %p595_p8 = por %p594_p7, %p593_p6 }
  0x12   :  { %p596_p9 = pnand %p595_p8, %p589_p5 }
  0x14   :  { %599 = shalt.err (!%p596_p9)
}
  0x15   :  { %25 = dma.hbm_to_vmem [thread:$0]  %s716_s1, 1024, %s20_s21, [#allocation3], %s626_s23, %s626_s23, %s627_s24  }
  0x16   :  { %s628_s30 = smov [#allocation6]  }
  0x17   :  { %s43_s6 = sshll.u32 %s628_s30, 4  ;;  %s44_s6 = int_to_ptr.vmem [resolvable:$true] %s43_s6 }
  0x18   :  { %s608_s7 = scalar_lea.vmem %s44_s6, 1024  ;;  %p613_p11 = scmp.lt.s32.totalorder %s44_s6, %s44_s6 }
  0x19   :  { %p609_p10 = scmp.ne.s32.totalorder %s44_s6, %s608_s7  ;;  %p614_p12 = scmp.lt.s32.totalorder %s608_s7, %s608_s7 }
  0x1b   :  { %p615_p13 = por %p614_p12, %p613_p11 }
  0x1d   :  { %p616_p0 = pnand %p615_p13, %p609_p10 }
  0x1f   :  { %619 = shalt.err (!%p616_p0)
}
  0x20   :  { %49 = dma.hbm_to_vmem [thread:$0]  %s718_s3, 1024, %s44_s6, [#allocation5], %s626_s23, %s626_s23, %s627_s24  }
  0x21   :  { %620 = dma.done.wait [#allocation3], 1024  }
  0x22   :  { %621 = vsyncadd [#allocation3], 4294966272 }
  0x23   :  { %622 = dma.done.wait [#allocation5], 2048  }
  0x24   :  { %623 = vsyncadd [#allocation5], 4294965248  ;;  %v629_v0 = vmov 0.0   ;;  %vm630_vm0 = vmmov 0   ;;  %v532_v1 = vld [vmem:[#allocation2 + $0x38] sm:$0xff]   ;;  %v533_v2 = vld [vmem:[#allocation2 + $0x30] sm:$0xff]  }
  0x25   :  { %465 = vmatprep.subr.bf16.mxu0 %v629_v0  ;;  %481 = vmatprep.mubr.msk.bf16.mxu0 %vm630_vm0, %v629_v0  ;;  %v534_v3 = vld [vmem:[#allocation2 + $0x28] sm:$0xff]   ;;  %v540_v4 = vld [vmem:[#allocation4 + $0x38] sm:$0xff]   ;;  %v535_v5 = vld [vmem:[#allocation2 + $0x20] sm:$0xff]  }
  0x26   :  { %485 = vmatprep.subr.bf16.mxu1 %v629_v0  ;;  %501 = vmatprep.mubr.msk.bf16.mxu1 %vm630_vm0, %v629_v0  ;;  %v541_v6 = vld [vmem:[#allocation4 + $0x30] sm:$0xff]   ;;  %v536_v7 = vld [vmem:[#allocation2 + $0x18] sm:$0xff]   ;;  %v542_v8 = vld [vmem:[#allocation4 + $0x28] sm:$0xff]  }
  0x27   :  { %466 = vmatpush3.bf16.msra.mxu0 %v532_v1  ;;  %486 = vmatpush3.bf16.msra.mxu1 %v540_v4  ;;  %v537_v9 = vld [vmem:[#allocation2 + $0x10] sm:$0xff]   ;;  %v543_v10 = vld [vmem:[#allocation4 + $0x20] sm:$0xff]   ;;  %v538_v11 = vld [vmem:[#allocation2 + $0x8] sm:$0xff]  }
  0x28   :  { %467 = vmatprep.subr.bf16.mxu0 %v629_v0  ;;  %487 = vmatprep.subr.bf16.mxu1 %v629_v0  ;;  %v544_v12 = vld [vmem:[#allocation4 + $0x18] sm:$0xff]   ;;  %v539_v13 = vld [vmem:[#allocation2] sm:$0xff]   ;;  %v545_v15 = vld [vmem:[#allocation4 + $0x10] sm:$0xff]  }
  0x29   :  { %v62_v14 = vld [vmem:[%s715_s0] sm:$0xff]  ;;  %v546_v17 = vld [vmem:[#allocation4 + $0x8] sm:$0xff]   ;;  %v548_v19 = vld [vmem:[#allocation6 + $0x38] sm:$0xff]  }
  0x2a   :  { %v63_v16 = vpack.c.bf16 %v62_v14, %v62_v14  ;;  %v547_v18 = vld [vmem:[#allocation4] sm:$0xff]   ;;  %v549_v20 = vld [vmem:[#allocation6 + $0x30] sm:$0xff]   ;;  %v550_v21 = vld [vmem:[#allocation6 + $0x28] sm:$0xff]  }
  0x2b   :  { %468 = vmatpush3.bf16.msra.mxu0 %v533_v2  ;;  %488 = vmatpush3.bf16.msra.mxu1 %v541_v6  ;;  %v551_v22 = vld [vmem:[#allocation6 + $0x20] sm:$0xff]   ;;  %v552_v23 = vld [vmem:[#allocation6 + $0x18] sm:$0xff]   ;;  %v553_v24 = vld [vmem:[#allocation6 + $0x10] sm:$0xff]  }
  0x2c   :  { %469 = vmatprep.subr.bf16.mxu0 %v629_v0  ;;  %489 = vmatprep.subr.bf16.mxu1 %v629_v0  ;;  %v411_v25 = vld [vmem:[%s719_s4] ss:$0 sm:$0xff]  ;;  %v554_v33 = vld [vmem:[#allocation6 + $0x8] sm:$0xff]   ;;  %v420_v35 = vld [vmem:[%s719_s4 + $0x1] ss:$0 sm:$0xff] }
  0x2d   :  { %v555_v34 = vld [vmem:[#allocation6] sm:$0xff]  }
  0x2e   :  { %v429_v43 = vld [vmem:[%s719_s4 + $0x2] ss:$0 sm:$0xff] }
  0x2f   :  { %470 = vmatpush3.bf16.msra.mxu0 %v534_v3  ;;  %490 = vmatpush3.bf16.msra.mxu1 %v542_v8 }
  0x30   :  { %471 = vmatprep.subr.bf16.mxu0 %v629_v0  ;;  %491 = vmatprep.subr.bf16.mxu1 %v629_v0 }
  0x33   :  { %472 = vmatpush3.bf16.msra.mxu0 %v535_v5  ;;  %492 = vmatpush3.bf16.msra.mxu1 %v543_v10 }
  0x34   :  { %473 = vmatprep.subr.bf16.mxu0 %v629_v0  ;;  %493 = vmatprep.subr.bf16.mxu1 %v629_v0 }
  0x37   :  { %474 = vmatpush3.bf16.msra.mxu0 %v536_v7  ;;  %494 = vmatpush3.bf16.msra.mxu1 %v544_v12 }
  0x38   :  { %475 = vmatprep.subr.bf16.mxu0 %v629_v0  ;;  %495 = vmatprep.subr.bf16.mxu1 %v629_v0 }
  0x3b   :  { %476 = vmatpush3.bf16.msra.mxu0 %v537_v9  ;;  %496 = vmatpush3.bf16.msra.mxu1 %v545_v15 }
  0x3c   :  { %477 = vmatprep.subr.bf16.mxu0 %v629_v0  ;;  %497 = vmatprep.subr.bf16.mxu1 %v629_v0 }
  0x3f   :  { %478 = vmatpush3.bf16.msra.mxu0 %v538_v11  ;;  %498 = vmatpush3.bf16.msra.mxu1 %v546_v17 }
  0x40   :  { %479 = vmatprep.subr.bf16.mxu0 %v629_v0  ;;  %499 = vmatprep.subr.bf16.mxu1 %v629_v0 }
  0x43   :  { %480 = vmatpush3.bf16.msra.mxu0 %v539_v13  ;;  %500 = vmatpush3.bf16.msra.mxu1 %v547_v18 }
  0x44   :  { %505 = vmatprep.subr.bf16.mxu0 %v629_v0 }
  0x46   :  { %482 = vmatmul.mubr.bf16.vlgmr.msra.gmra.mxu0 %v63_v16 }
  0x47   :  { %521 = vmatprep.mubr.msk.bf16.mxu0 %vm630_vm0, %v629_v0  ;;  %506 = vmatpush3.bf16.msra.mxu0 %v548_v19 }
  0x48   :  { %507 = vmatprep.subr.bf16.mxu0 %v629_v0 }
  0x4b   :  { %508 = vmatpush3.bf16.msra.mxu0 %v549_v20 }
  0x4c   :  { %509 = vmatprep.subr.bf16.mxu0 %v629_v0 }
  0x4f   :  { %510 = vmatpush3.bf16.msra.mxu0 %v550_v21 }
  0x50   :  { %511 = vmatprep.subr.bf16.mxu0 %v629_v0 }
  0x53   :  { %512 = vmatpush3.bf16.msra.mxu0 %v551_v22 }
  0x54   :  { %513 = vmatprep.subr.bf16.mxu0 %v629_v0 }
  0x57   :  { %514 = vmatpush3.bf16.msra.mxu0 %v552_v23 }
  0x58   :  { %515 = vmatprep.subr.bf16.mxu0 %v629_v0 }
  0x5b   :  { %516 = vmatpush3.bf16.msra.mxu0 %v553_v24 }
  0x5c   :  { %517 = vmatprep.subr.bf16.mxu0 %v629_v0 }
  0x5f   :  { %518 = vmatpush3.bf16.msra.mxu0 %v554_v33 }
  0x60   :  { %519 = vmatprep.subr.bf16.mxu0 %v629_v0 }
  0x63   :  { %520 = vmatpush3.bf16.msra.mxu0 %v555_v34 }
 0x106   :  { %v169_v26 = vpop.f32.mrf.mxu0 }
 0x107   :  { %v170_v27 = vadd.f32 %v411_v25, %v169_v26 }
 0x108   :  { %v483_v28 = vpop.f32.mrf.mxu0 }
 0x109   :  { %v175_v29 = vmax.f32 %v170_v27, 0.0 }
 0x10a   :  { %v172_v30 = vpop.f32.mrf.mxu0 }
 0x10b   :  { %v176_v31 = vpack.c.bf16 %v175_v29, %v175_v29 }
 0x10c   :  { %v484_v32 = vpop.f32.mrf.mxu0 }
 0x10d   :  { %502 = vmatmul.mubr.bf16.vlgmr.msra.gmra.mxu1 %v176_v31 }
 0x1cd   :  { %v279_v36 = vpop.f32.mrf.mxu1 }
 0x1ce   :  { %v280_v37 = vadd.f32 %v420_v35, %v279_v36 }
 0x1cf   :  { %v503_v38 = vpop.f32.mrf.mxu1 }
 0x1d0   :  { %v285_v39 = vmax.f32 %v280_v37, 0.0 }
 0x1d1   :  { %v282_v40 = vpop.f32.mrf.mxu1 }
 0x1d2   :  { %v286_v41 = vpack.c.bf16 %v285_v39, %v285_v39 }
 0x1d3   :  { %v504_v42 = vpop.f32.mrf.mxu1 }
 0x1d4   :  { %522 = vmatmul.mubr.bf16.vlgmr.msra.gmra.mxu0 %v286_v41 }
 0x294   :  { %v389_v44 = vpop.f32.mrf.mxu0 }
 0x295   :  { %v390_v45 = vadd.f32 %v429_v43, %v389_v44 }
 0x296   :  { %v523_v46 = vpop.f32.mrf.mxu0 }
 0x297   :  { %395 = vmax.xlane.f32.xlu0 %v390_v45 }
 0x298   :  { %v392_v47 = vpop.f32.mrf.mxu0 }
 0x29a   :  { %v524_v48 = vpop.f32.mrf.mxu0 }
 0x320   :  { %v396_v49 = vpop.xlane.xlu0 %395 }
 0x321   :  { %v397_v50 = vsub.f32 %v390_v45, %v396_v49 }
 0x323   :  { %v398_v51 = vmul.f32 1.442695, %v397_v50 }
 0x325   :  { %556 = vpow2.f32 %v398_v51 }
 0x332   :  { %v557_v52 = vpop.eup %556 }
 0x333   :  { %400 = vadd.xlane.f32.xlu0 %v557_v52 }
 0x3bc   :  { %v401_v53 = vpop.xlane.xlu0 %400 }
 0x3bd   :  { %558 = vrcp.f32 %v401_v53 }
 0x3ca   :  { %v559_v54 = vpop.eup %558 }
 0x3cb   :  { %v403_v55 = vmul.f32 %v559_v54, %v557_v52 }
 0x3cd   :  { %404 = vst [vmem:[%s720_s5] sm:$0xff] %v403_v55 }
 0x3ce   :  { %409 = vsyncpa [#allocation3], 1 }
 0x3cf   :  { %410 = vsyncpa [#allocation5], 1 }

</bundles_post_ra>
